<compile_context>
chip_gen: v6e
topology: v6e:2x2x1
jax: 0.10.0
libtpu: 0.0.40
codegen_flags: <defaults>
</compile_context>

<pallas_src>
import itertools
import numpy as np
import jax
import jax.numpy as jnp
from jax.experimental import pallas as pl
from jax.experimental.pallas import tpu as pltpu


def _round_up(x, m):
    return (x + m - 1) // m * m


# ----------------------------------------------------------------------------
# Kernel 1 (primary): fused gather + matmul.
#   o[tn, Coutp] = bias + sum_k  table[idx[:, k]] @ W[k]
# table / W / bias are VMEM-resident (constant index_map); only the index tile
# and the output tile stream per grid step, so HBM feature traffic is N*C once
# (not 27x) per forward.
# ----------------------------------------------------------------------------
def _fused_gather_matmul_kernel(idx_ref, feat_ref, w_ref, b_ref, o_ref):
    tn = o_ref.shape[0]
    cpad = feat_ref.shape[1]
    k3 = idx_ref.shape[1]

    table = feat_ref[...]              # (Ntab_pad, Cpad), resident
    idx = idx_ref[...]                 # (tn, K3) int32

    acc = jnp.zeros(o_ref.shape, jnp.float32)
    for k in range(k3):                # static unroll (K3 = 27)
        rows = jnp.broadcast_to(idx[:, k:k + 1], (tn, cpad))
        g_k = jnp.take_along_axis(table, rows, axis=0)          # row gather, VMEM only
        acc = acc + jnp.dot(g_k, w_ref[k], preferred_element_type=jnp.float32)
    o_ref[...] = (acc + b_ref[...]).astype(o_ref.dtype)


# ----------------------------------------------------------------------------
# Kernel 2 (fallback if the in-kernel gather does not lower on this Mosaic build):
# K^3 folded into the contraction, single lane-dense matmul per N-tile.
#   o[tn, Coutp] = bias + g[tn, K3*Cin_pad] @ Wf[K3*Cin_pad, Coutp]
# ----------------------------------------------------------------------------
def _folded_matmul_kernel(g_ref, w_ref, b_ref, o_ref):
    o_ref[...] = (
        jnp.dot(g_ref[...], w_ref[...], preferred_element_type=jnp.float32)
        + b_ref[...]
    ).astype(o_ref.dtype)


def _conv_fused(idx_pad, table, w_pad, b_pad, tn, n_tiles):
    n_pad, k3 = idx_pad.shape
    ntab, cpad = table.shape
    cout_pad = w_pad.shape[-1]
    return pl.pallas_call(
        _fused_gather_matmul_kernel,
        out_shape=jax.ShapeDtypeStruct((n_pad, cout_pad), jnp.float32),
        grid_spec=pltpu.PrefetchScalarGridSpec(
            num_scalar_prefetch=0,
            grid=(n_tiles,),
            in_specs=[
                pl.BlockSpec((tn, k3), lambda i: (i, 0)),               # idx tile
                pl.BlockSpec((ntab, cpad), lambda i: (0, 0)),           # resident feats
                pl.BlockSpec((k3, cpad, cout_pad), lambda i: (0, 0, 0)),# resident weight
                pl.BlockSpec((1, cout_pad), lambda i: (0, 0)),          # resident bias
            ],
            out_specs=pl.BlockSpec((tn, cout_pad), lambda i: (i, 0)),
        ),
        compiler_params=pltpu.CompilerParams(
            dimension_semantics=("parallel",),
        ),
    )(idx_pad, table, w_pad, b_pad)


def _conv_pregathered(g_pad, wf_pad, b_pad, tn, n_tiles):
    n_pad, kc_pad = g_pad.shape
    cout_pad = wf_pad.shape[-1]
    return pl.pallas_call(
        _folded_matmul_kernel,
        out_shape=jax.ShapeDtypeStruct((n_pad, cout_pad), jnp.float32),
        grid_spec=pltpu.PrefetchScalarGridSpec(
            num_scalar_prefetch=0,
            grid=(n_tiles,),
            in_specs=[
                pl.BlockSpec((tn, kc_pad), lambda i: (i, 0)),           # folded gather tile
                pl.BlockSpec((kc_pad, cout_pad), lambda i: (0, 0)),     # resident weight
                pl.BlockSpec((1, cout_pad), lambda i: (0, 0)),          # resident bias
            ],
            out_specs=pl.BlockSpec((tn, cout_pad), lambda i: (i, 0)),
        ),
        compiler_params=pltpu.CompilerParams(
            dimension_semantics=("parallel",),
        ),
    )(g_pad, wf_pad, b_pad)


# ----------------------------------------------------------------------------
# Minkowski-style kernel map (vectorized numpy hashing) for a stride-1 conv.
# Output coordinates == input coordinates; missing neighbors -> sentinel row N.
# ----------------------------------------------------------------------------
def build_kernel_offsets(kernel_size, dimension=3):
    r = kernel_size // 2
    rng = range(-r, r + 1)
    return np.array(list(itertools.product(rng, repeat=dimension)), dtype=np.int32)


def build_kernel_map(coords_np, offsets_np):
    """idx[N, K3]: row index of the point at coords[i] + offsets[k] (same batch),
    or N (sentinel -> zero row) if that coordinate is unoccupied."""
    coords = np.asarray(coords_np, dtype=np.int64)              # [N, 4] = (b, x, y, z)
    offs = np.asarray(offsets_np, dtype=np.int64)               # [K3, 3]
    N = coords.shape[0]
    K3 = offs.shape[0]

    off4 = np.concatenate([np.zeros((K3, 1), np.int64), offs], axis=1)   # [K3, 4]
    neigh = coords[None, :, :] + off4[:, None, :]                        # [K3, N, 4]

    allc = np.concatenate([coords, neigh.reshape(-1, 4)], axis=0)
    cmin = allc.min(axis=0)
    span = allc.max(axis=0) - cmin + 1

    def lin(c):
        key = c[:, 0] - cmin[0]
        for d in range(1, 4):
            key = key * span[d] + (c[:, d] - cmin[d])
        return key

    keys = lin(coords)
    order = np.argsort(keys, kind="stable")
    skeys = keys[order]
    nkeys = lin(neigh.reshape(-1, 4))
    pos = np.searchsorted(skeys, nkeys)
    pos_c = np.minimum(pos, N - 1)
    found = skeys[pos_c] == nkeys
    idx = np.where(found, order[pos_c], N).astype(np.int32)             # [K3*N]
    return np.ascontiguousarray(idx.reshape(K3, N).T)                   # [N, K3]


# ----------------------------------------------------------------------------
# Forward wrapper (returns exactly what scg_conv.forward returns: channel_conv(x)).
# ----------------------------------------------------------------------------
def scg_conv_forward(coords_np, features, weight, bias, kernel_size, th=0.5,
                     compute_dtype=jnp.float32, tile_n=512):
    """features: [N, Cin], weight: [K3, Cin, Cout] (Minkowski layout), bias: [1, Cout].
    compute_dtype=jnp.bfloat16 halves the memory-bound feature stream on v6e/v7x
    (accumulation stays float32). tile_n: N-tile; size against VMEM (v7x has 64 MiB)."""
    del th  # unused by the returned value of the reference forward
    N, Cin = features.shape
    K3, _, Cout = weight.shape

    offsets = build_kernel_offsets(kernel_size)
    idx = build_kernel_map(coords_np, offsets)                  # [N, K3] int32

    tn = min(tile_n, _round_up(N, 8))
    n_pad = _round_up(N, tn)
    n_tiles = n_pad // tn
    cpad = _round_up(Cin, 128)                                  # lane-dense contraction
    cout_pad = _round_up(Cout, 128)                             # lane-dense output
    ntab = _round_up(N + 1, 8)                                  # +1 zero row (sentinel)

    idx_full = np.full((n_pad, K3), N, dtype=np.int32)
    idx_full[:N] = idx
    idx_pad = jnp.asarray(idx_full)

    w = jnp.asarray(weight, jnp.float32)
    bias_pad = jnp.zeros((1, cout_pad), jnp.float32).at[:, :Cout].set(
        jnp.asarray(bias, jnp.float32).reshape(1, Cout))

    try:
        # -- primary: fused in-kernel gather (no 27x gathered tensor in HBM) -----
        table = jnp.zeros((ntab, cpad), compute_dtype).at[:N, :Cin].set(
            features.astype(compute_dtype))
        w_pad = jnp.zeros((K3, cpad, cout_pad), compute_dtype).at[:, :Cin, :Cout].set(
            w.astype(compute_dtype))
        out = _conv_fused(idx_pad, table, w_pad, bias_pad, tn, n_tiles)
        out = jax.block_until_ready(out)
    except Exception:
        # -- fallback: Mosaic gather lowering unavailable on this build ----------
        # Pre-gather in the wrapper, but K^3 folded into a single lane-dense
        # contraction per N-tile (still tiled/parallel/padded, weight resident).
        kc = K3 * Cin
        kc_pad = _round_up(kc, 128)
        feats_z = jnp.concatenate(
            [features, jnp.zeros((1, Cin), features.dtype)], axis=0)
        gathered = feats_z[idx_pad].reshape(n_pad, kc)          # [n_pad, K3*Cin]
        g_pad = jnp.zeros((n_pad, kc_pad), compute_dtype).at[:, :kc].set(
            gathered.astype(compute_dtype))
        wf_pad = jnp.zeros((kc_pad, cout_pad), compute_dtype).at[:kc, :Cout].set(
            w.reshape(kc, Cout).astype(compute_dtype))
        out = _conv_pregathered(g_pad, wf_pad, bias_pad, tn, n_tiles)
        out = jax.block_until_ready(out)

    return out[:N, :Cout]


# pure-JAX reference for sanity checking
def scg_conv_reference(coords_np, features, weight, bias, kernel_size):
    N, Cin = features.shape
    offsets = build_kernel_offsets(kernel_size)
    idx = jnp.asarray(build_kernel_map(coords_np, offsets))     # [N, K3]
    feats_p = jnp.concatenate(
        [features, jnp.zeros((1, Cin), dtype=features.dtype)], axis=0)
    gathered = feats_p[idx]                                     # [N, K3, Cin]
    return jnp.einsum("nki,kio->no", gathered, weight) + bias


if __name__ == "__main__":
    # Small synthetic sparse tensor: 64 occupied voxels of an 8^3 grid, batch=1.
    N, Cin, Cout, K = 64, 4, 8, 3
    K3 = K ** 3

    key = jax.random.PRNGKey(0)
    k_coord, k_feat, k_w, k_b = jax.random.split(key, 4)

    grid = np.array(list(itertools.product(range(8), repeat=3)), dtype=np.int32)
    perm = np.asarray(jax.random.permutation(k_coord, grid.shape[0]))[:N]
    xyz = grid[np.sort(perm)]
    coords_np = np.concatenate(
        [np.zeros((N, 1), dtype=np.int32), xyz], axis=1)        # [N, 4] = (b, x, y, z)

    features = jax.random.normal(k_feat, (N, Cin), dtype=jnp.float32)

    # Channel_code forces bias=True on its MinkowskiConvolution.
    fan = Cin * K3
    weight = jax.random.normal(k_w, (K3, Cin, Cout), dtype=jnp.float32) / np.sqrt(fan)
    bias = jax.random.normal(k_b, (1, Cout), dtype=jnp.float32) * 0.01

    ref = scg_conv_reference(coords_np, features, weight, bias, kernel_size=K)

    # float32 path (tight tolerance)
    out_f32 = scg_conv_forward(coords_np, features, weight, bias, kernel_size=K, th=0.5)
    out_f32 = jax.block_until_ready(out_f32)
    np.testing.assert_allclose(np.asarray(out_f32), np.asarray(ref),
                               rtol=1e-5, atol=1e-5)

    # bf16 compute stream (v6e/v7x memory-roofline option), f32 accumulation
    out_bf16 = scg_conv_forward(coords_np, features, weight, bias, kernel_size=K,
                                th=0.5, compute_dtype=jnp.bfloat16)
    out_bf16 = jax.block_until_ready(out_bf16)
    np.testing.assert_allclose(np.asarray(out_bf16), np.asarray(ref),
                               rtol=5e-2, atol=5e-2)

    print("KERNEL_OK")
</pallas_src>

<mosaic_0001>
module attributes {stable_mosaic.version = 11 : i64} {
  func.func @_fused_gather_matmul_kernel(%arg0: i32, %arg1: memref<64x27xi32, #tpu.memory_space<vmem>>, %arg2: memref<72x128xf32, #tpu.memory_space<vmem>>, %arg3: memref<27x128x128xf32, #tpu.memory_space<vmem>>, %arg4: memref<1x128xf32, #tpu.memory_space<vmem>>, %arg5: memref<64x128xf32, #tpu.memory_space<vmem>>) attributes {dimension_semantics = [#tpu.dimension_semantics<parallel>], iteration_bounds = array<i64: 1>, scalar_prefetch = 0 : i64, scratch_operands = 0 : i64, tpu.core_type = #tpu.core_type<tc>, window_params = [{transform_indices = @transform_0, window_bounds = array<i64: 64, 27>}, {pipeline_mode = #tpu.pipeline_mode<synchronous>, transform_indices = @transform_1, window_bounds = array<i64: 72, 128>}, {pipeline_mode = #tpu.pipeline_mode<synchronous>, transform_indices = @transform_2, window_bounds = array<i64: 27, 128, 128>}, {pipeline_mode = #tpu.pipeline_mode<synchronous>, transform_indices = @transform_3, window_bounds = array<i64: 1, 128>}, {transform_indices = @transform_4, window_bounds = array<i64: 64, 128>}]} {
    %c0 = arith.constant 0 : index
    %c0_0 = arith.constant 0 : index
    %0 = vector.load %arg2[%c0, %c0_0] : memref<72x128xf32, #tpu.memory_space<vmem>>, vector<72x128xf32>
    %c0_1 = arith.constant 0 : index
    %c0_2 = arith.constant 0 : index
    %1 = vector.load %arg1[%c0_1, %c0_2] : memref<64x27xi32, #tpu.memory_space<vmem>>, vector<64x27xi32>
    %cst = arith.constant 0.000000e+00 : f32
    %2 = vector.broadcast %cst : f32 to vector<64x128xf32>
    %3 = vector.extract_strided_slice %1 {offsets = [0, 0], sizes = [64, 1], strides = [1, 1]} : vector<64x27xi32> to vector<64x1xi32>
    %4 = vector.shape_cast %3 : vector<64x1xi32> to vector<64x1xi32>
    %5 = vector.broadcast %4 : vector<64x1xi32> to vector<64x128xi32>
    %c0_i32 = arith.constant 0 : i32
    %6 = vector.broadcast %c0_i32 : i32 to vector<64x128xi32>
    %7 = arith.cmpi slt, %5, %6 : vector<64x128xi32>
    %c72_i32 = arith.constant 72 : i32
    %8 = vector.broadcast %c72_i32 : i32 to vector<64x128xi32>
    %9 = arith.addi %5, %8 : vector<64x128xi32>
    %10 = arith.select %7, %9, %5 : vector<64x128xi1>, vector<64x128xi32>
    %11 = vector.shape_cast %10 : vector<64x128xi32> to vector<64x128x1xi32>
    %12 = vector.shape_cast %11 : vector<64x128x1xi32> to vector<64x128xi32>
    %13 = tpu.dynamic_gather %0[%12] in [0] : vector<72x128xf32>, vector<64x128xi32> -> vector<64x128xf32>
    %c0_3 = arith.constant 0 : index
    %c0_4 = arith.constant 0 : index
    %c0_5 = arith.constant 0 : index
    %14 = vector.load %arg3[%c0_3, %c0_4, %c0_5] : memref<27x128x128xf32, #tpu.memory_space<vmem>>, vector<1x128x128xf32>
    %15 = vector.shape_cast %14 : vector<1x128x128xf32> to vector<128x128xf32>
    %cst_6 = arith.constant dense<0.000000e+00> : vector<64x128xf32>
    %16 = tpu.matmul %13, %15, %cst_6 {dimension_numbers = #tpu.dot_dimension_numbers<[1], [0], [0], [1], [0, 0, 1, 1], [], []>} : vector<64x128xf32>, vector<128x128xf32>, vector<64x128xf32> -> vector<64x128xf32>
    %17 = arith.addf %2, %16 : vector<64x128xf32>
    %18 = vector.extract_strided_slice %1 {offsets = [0, 1], sizes = [64, 1], strides = [1, 1]} : vector<64x27xi32> to vector<64x1xi32>
    %19 = vector.shape_cast %18 : vector<64x1xi32> to vector<64x1xi32>
    %20 = vector.broadcast %19 : vector<64x1xi32> to vector<64x128xi32>
    %c0_i32_7 = arith.constant 0 : i32
    %21 = vector.broadcast %c0_i32_7 : i32 to vector<64x128xi32>
    %22 = arith.cmpi slt, %20, %21 : vector<64x128xi32>
    %c72_i32_8 = arith.constant 72 : i32
    %23 = vector.broadcast %c72_i32_8 : i32 to vector<64x128xi32>
    %24 = arith.addi %20, %23 : vector<64x128xi32>
    %25 = arith.select %22, %24, %20 : vector<64x128xi1>, vector<64x128xi32>
    %26 = vector.shape_cast %25 : vector<64x128xi32> to vector<64x128x1xi32>
    %27 = vector.shape_cast %26 : vector<64x128x1xi32> to vector<64x128xi32>
    %28 = tpu.dynamic_gather %0[%27] in [0] : vector<72x128xf32>, vector<64x128xi32> -> vector<64x128xf32>
    %c1 = arith.constant 1 : index
    %c0_9 = arith.constant 0 : index
    %c0_10 = arith.constant 0 : index
    %29 = vector.load %arg3[%c1, %c0_9, %c0_10] : memref<27x128x128xf32, #tpu.memory_space<vmem>>, vector<1x128x128xf32>
    %30 = vector.shape_cast %29 : vector<1x128x128xf32> to vector<128x128xf32>
    %cst_11 = arith.constant dense<0.000000e+00> : vector<64x128xf32>
    %31 = tpu.matmul %28, %30, %cst_11 {dimension_numbers = #tpu.dot_dimension_numbers<[1], [0], [0], [1], [0, 0, 1, 1], [], []>} : vector<64x128xf32>, vector<128x128xf32>, vector<64x128xf32> -> vector<64x128xf32>
    %32 = arith.addf %17, %31 : vector<64x128xf32>
    %33 = vector.extract_strided_slice %1 {offsets = [0, 2], sizes = [64, 1], strides = [1, 1]} : vector<64x27xi32> to vector<64x1xi32>
    %34 = vector.shape_cast %33 : vector<64x1xi32> to vector<64x1xi32>
    %35 = vector.broadcast %34 : vector<64x1xi32> to vector<64x128xi32>
    %c0_i32_12 = arith.constant 0 : i32
    %36 = vector.broadcast %c0_i32_12 : i32 to vector<64x128xi32>
    %37 = arith.cmpi slt, %35, %36 : vector<64x128xi32>
    %c72_i32_13 = arith.constant 72 : i32
    %38 = vector.broadcast %c72_i32_13 : i32 to vector<64x128xi32>
    %39 = arith.addi %35, %38 : vector<64x128xi32>
    %40 = arith.select %37, %39, %35 : vector<64x128xi1>, vector<64x128xi32>
    %41 = vector.shape_cast %40 : vector<64x128xi32> to vector<64x128x1xi32>
    %42 = vector.shape_cast %41 : vector<64x128x1xi32> to vector<64x128xi32>
    %43 = tpu.dynamic_gather %0[%42] in [0] : vector<72x128xf32>, vector<64x128xi32> -> vector<64x128xf32>
    %c2 = arith.constant 2 : index
    %c0_14 = arith.constant 0 : index
    %c0_15 = arith.constant 0 : index
    %44 = vector.load %arg3[%c2, %c0_14, %c0_15] : memref<27x128x128xf32, #tpu.memory_space<vmem>>, vector<1x128x128xf32>
    %45 = vector.shape_cast %44 : vector<1x128x128xf32> to vector<128x128xf32>
    %cst_16 = arith.constant dense<0.000000e+00> : vector<64x128xf32>
    %46 = tpu.matmul %43, %45, %cst_16 {dimension_numbers = #tpu.dot_dimension_numbers<[1], [0], [0], [1], [0, 0, 1, 1], [], []>} : vector<64x128xf32>, vector<128x128xf32>, vector<64x128xf32> -> vector<64x128xf32>
    %47 = arith.addf %32, %46 : vector<64x128xf32>
    %48 = vector.extract_strided_slice %1 {offsets = [0, 3], sizes = [64, 1], strides = [1, 1]} : vector<64x27xi32> to vector<64x1xi32>
    %49 = vector.shape_cast %48 : vector<64x1xi32> to vector<64x1xi32>
    %50 = vector.broadcast %49 : vector<64x1xi32> to vector<64x128xi32>
    %c0_i32_17 = arith.constant 0 : i32
    %51 = vector.broadcast %c0_i32_17 : i32 to vector<64x128xi32>
    %52 = arith.cmpi slt, %50, %51 : vector<64x128xi32>
    %c72_i32_18 = arith.constant 72 : i32
    %53 = vector.broadcast %c72_i32_18 : i32 to vector<64x128xi32>
    %54 = arith.addi %50, %53 : vector<64x128xi32>
    %55 = arith.select %52, %54, %50 : vector<64x128xi1>, vector<64x128xi32>
    %56 = vector.shape_cast %55 : vector<64x128xi32> to vector<64x128x1xi32>
    %57 = vector.shape_cast %56 : vector<64x128x1xi32> to vector<64x128xi32>
    %58 = tpu.dynamic_gather %0[%57] in [0] : vector<72x128xf32>, vector<64x128xi32> -> vector<64x128xf32>
    %c3 = arith.constant 3 : index
    %c0_19 = arith.constant 0 : index
    %c0_20 = arith.constant 0 : index
    %59 = vector.load %arg3[%c3, %c0_19, %c0_20] : memref<27x128x128xf32, #tpu.memory_space<vmem>>, vector<1x128x128xf32>
    %60 = vector.shape_cast %59 : vector<1x128x128xf32> to vector<128x128xf32>
    %cst_21 = arith.constant dense<0.000000e+00> : vector<64x128xf32>
    %61 = tpu.matmul %58, %60, %cst_21 {dimension_numbers = #tpu.dot_dimension_numbers<[1], [0], [0], [1], [0, 0, 1, 1], [], []>} : vector<64x128xf32>, vector<128x128xf32>, vector<64x128xf32> -> vector<64x128xf32>
    %62 = arith.addf %47, %61 : vector<64x128xf32>
    %63 = vector.extract_strided_slice %1 {offsets = [0, 4], sizes = [64, 1], strides = [1, 1]} : vector<64x27xi32> to vector<64x1xi32>
    %64 = vector.shape_cast %63 : vector<64x1xi32> to vector<64x1xi32>
    %65 = vector.broadcast %64 : vector<64x1xi32> to vector<64x128xi32>
    %c0_i32_22 = arith.constant 0 : i32
    %66 = vector.broadcast %c0_i32_22 : i32 to vector<64x128xi32>
    %67 = arith.cmpi slt, %65, %66 : vector<64x128xi32>
    %c72_i32_23 = arith.constant 72 : i32
    %68 = vector.broadcast %c72_i32_23 : i32 to vector<64x128xi32>
    %69 = arith.addi %65, %68 : vector<64x128xi32>
    %70 = arith.select %67, %69, %65 : vector<64x128xi1>, vector<64x128xi32>
    %71 = vector.shape_cast %70 : vector<64x128xi32> to vector<64x128x1xi32>
    %72 = vector.shape_cast %71 : vector<64x128x1xi32> to vector<64x128xi32>
    %73 = tpu.dynamic_gather %0[%72] in [0] : vector<72x128xf32>, vector<64x128xi32> -> vector<64x128xf32>
    %c4 = arith.constant 4 : index
    %c0_24 = arith.constant 0 : index
    %c0_25 = arith.constant 0 : index
    %74 = vector.load %arg3[%c4, %c0_24, %c0_25] : memref<27x128x128xf32, #tpu.memory_space<vmem>>, vector<1x128x128xf32>
    %75 = vector.shape_cast %74 : vector<1x128x128xf32> to vector<128x128xf32>
    %cst_26 = arith.constant dense<0.000000e+00> : vector<64x128xf32>
    %76 = tpu.matmul %73, %75, %cst_26 {dimension_numbers = #tpu.dot_dimension_numbers<[1], [0], [0], [1], [0, 0, 1, 1], [], []>} : vector<64x128xf32>, vector<128x128xf32>, vector<64x128xf32> -> vector<64x128xf32>
    %77 = arith.addf %62, %76 : vector<64x128xf32>
    %78 = vector.extract_strided_slice %1 {offsets = [0, 5], sizes = [64, 1], strides = [1, 1]} : vector<64x27xi32> to vector<64x1xi32>
    %79 = vector.shape_cast %78 : vector<64x1xi32> to vector<64x1xi32>
    %80 = vector.broadcast %79 : vector<64x1xi32> to vector<64x128xi32>
    %c0_i32_27 = arith.constant 0 : i32
    %81 = vector.broadcast %c0_i32_27 : i32 to vector<64x128xi32>
    %82 = arith.cmpi slt, %80, %81 : vector<64x128xi32>
    %c72_i32_28 = arith.constant 72 : i32
    %83 = vector.broadcast %c72_i32_28 : i32 to vector<64x128xi32>
    %84 = arith.addi %80, %83 : vector<64x128xi32>
    %85 = arith.select %82, %84, %80 : vector<64x128xi1>, vector<64x128xi32>
    %86 = vector.shape_cast %85 : vector<64x128xi32> to vector<64x128x1xi32>
    %87 = vector.shape_cast %86 : vector<64x128x1xi32> to vector<64x128xi32>
    %88 = tpu.dynamic_gather %0[%87] in [0] : vector<72x128xf32>, vector<64x128xi32> -> vector<64x128xf32>
    %c5 = arith.constant 5 : index
    %c0_29 = arith.constant 0 : index
    %c0_30 = arith.constant 0 : index
    %89 = vector.load %arg3[%c5, %c0_29, %c0_30] : memref<27x128x128xf32, #tpu.memory_space<vmem>>, vector<1x128x128xf32>
    %90 = vector.shape_cast %89 : vector<1x128x128xf32> to vector<128x128xf32>
    %cst_31 = arith.constant dense<0.000000e+00> : vector<64x128xf32>
    %91 = tpu.matmul %88, %90, %cst_31 {dimension_numbers = #tpu.dot_dimension_numbers<[1], [0], [0], [1], [0, 0, 1, 1], [], []>} : vector<64x128xf32>, vector<128x128xf32>, vector<64x128xf32> -> vector<64x128xf32>
    %92 = arith.addf %77, %91 : vector<64x128xf32>
    %93 = vector.extract_strided_slice %1 {offsets = [0, 6], sizes = [64, 1], strides = [1, 1]} : vector<64x27xi32> to vector<64x1xi32>
    %94 = vector.shape_cast %93 : vector<64x1xi32> to vector<64x1xi32>
    %95 = vector.broadcast %94 : vector<64x1xi32> to vector<64x128xi32>
    %c0_i32_32 = arith.constant 0 : i32
    %96 = vector.broadcast %c0_i32_32 : i32 to vector<64x128xi32>
    %97 = arith.cmpi slt, %95, %96 : vector<64x128xi32>
    %c72_i32_33 = arith.constant 72 : i32
    %98 = vector.broadcast %c72_i32_33 : i32 to vector<64x128xi32>
    %99 = arith.addi %95, %98 : vector<64x128xi32>
    %100 = arith.select %97, %99, %95 : vector<64x128xi1>, vector<64x128xi32>
    %101 = vector.shape_cast %100 : vector<64x128xi32> to vector<64x128x1xi32>
    %102 = vector.shape_cast %101 : vector<64x128x1xi32> to vector<64x128xi32>
    %103 = tpu.dynamic_gather %0[%102] in [0] : vector<72x128xf32>, vector<64x128xi32> -> vector<64x128xf32>
    %c6 = arith.constant 6 : index
    %c0_34 = arith.constant 0 : index
    %c0_35 = arith.constant 0 : index
    %104 = vector.load %arg3[%c6, %c0_34, %c0_35] : memref<27x128x128xf32, #tpu.memory_space<vmem>>, vector<1x128x128xf32>
    %105 = vector.shape_cast %104 : vector<1x128x128xf32> to vector<128x128xf32>
    %cst_36 = arith.constant dense<0.000000e+00> : vector<64x128xf32>
    %106 = tpu.matmul %103, %105, %cst_36 {dimension_numbers = #tpu.dot_dimension_numbers<[1], [0], [0], [1], [0, 0, 1, 1], [], []>} : vector<64x128xf32>, vector<128x128xf32>, vector<64x128xf32> -> vector<64x128xf32>
    %107 = arith.addf %92, %106 : vector<64x128xf32>
    %108 = vector.extract_strided_slice %1 {offsets = [0, 7], sizes = [64, 1], strides = [1, 1]} : vector<64x27xi32> to vector<64x1xi32>
    %109 = vector.shape_cast %108 : vector<64x1xi32> to vector<64x1xi32>
    %110 = vector.broadcast %109 : vector<64x1xi32> to vector<64x128xi32>
    %c0_i32_37 = arith.constant 0 : i32
    %111 = vector.broadcast %c0_i32_37 : i32 to vector<64x128xi32>
    %112 = arith.cmpi slt, %110, %111 : vector<64x128xi32>
    %c72_i32_38 = arith.constant 72 : i32
    %113 = vector.broadcast %c72_i32_38 : i32 to vector<64x128xi32>
    %114 = arith.addi %110, %113 : vector<64x128xi32>
    %115 = arith.select %112, %114, %110 : vector<64x128xi1>, vector<64x128xi32>
    %116 = vector.shape_cast %115 : vector<64x128xi32> to vector<64x128x1xi32>
    %117 = vector.shape_cast %116 : vector<64x128x1xi32> to vector<64x128xi32>
    %118 = tpu.dynamic_gather %0[%117] in [0] : vector<72x128xf32>, vector<64x128xi32> -> vector<64x128xf32>
    %c7 = arith.constant 7 : index
    %c0_39 = arith.constant 0 : index
    %c0_40 = arith.constant 0 : index
    %119 = vector.load %arg3[%c7, %c0_39, %c0_40] : memref<27x128x128xf32, #tpu.memory_space<vmem>>, vector<1x128x128xf32>
    %120 = vector.shape_cast %119 : vector<1x128x128xf32> to vector<128x128xf32>
    %cst_41 = arith.constant dense<0.000000e+00> : vector<64x128xf32>
    %121 = tpu.matmul %118, %120, %cst_41 {dimension_numbers = #tpu.dot_dimension_numbers<[1], [0], [0], [1], [0, 0, 1, 1], [], []>} : vector<64x128xf32>, vector<128x128xf32>, vector<64x128xf32> -> vector<64x128xf32>
    %122 = arith.addf %107, %121 : vector<64x128xf32>
    %123 = vector.extract_strided_slice %1 {offsets = [0, 8], sizes = [64, 1], strides = [1, 1]} : vector<64x27xi32> to vector<64x1xi32>
    %124 = vector.shape_cast %123 : vector<64x1xi32> to vector<64x1xi32>
    %125 = vector.broadcast %124 : vector<64x1xi32> to vector<64x128xi32>
    %c0_i32_42 = arith.constant 0 : i32
    %126 = vector.broadcast %c0_i32_42 : i32 to vector<64x128xi32>
    %127 = arith.cmpi slt, %125, %126 : vector<64x128xi32>
    %c72_i32_43 = arith.constant 72 : i32
    %128 = vector.broadcast %c72_i32_43 : i32 to vector<64x128xi32>
    %129 = arith.addi %125, %128 : vector<64x128xi32>
    %130 = arith.select %127, %129, %125 : vector<64x128xi1>, vector<64x128xi32>
    %131 = vector.shape_cast %130 : vector<64x128xi32> to vector<64x128x1xi32>
    %132 = vector.shape_cast %131 : vector<64x128x1xi32> to vector<64x128xi32>
    %133 = tpu.dynamic_gather %0[%132] in [0] : vector<72x128xf32>, vector<64x128xi32> -> vector<64x128xf32>
    %c8 = arith.constant 8 : index
    %c0_44 = arith.constant 0 : index
    %c0_45 = arith.constant 0 : index
    %134 = vector.load %arg3[%c8, %c0_44, %c0_45] : memref<27x128x128xf32, #tpu.memory_space<vmem>>, vector<1x128x128xf32>
    %135 = vector.shape_cast %134 : vector<1x128x128xf32> to vector<128x128xf32>
    %cst_46 = arith.constant dense<0.000000e+00> : vector<64x128xf32>
    %136 = tpu.matmul %133, %135, %cst_46 {dimension_numbers = #tpu.dot_dimension_numbers<[1], [0], [0], [1], [0, 0, 1, 1], [], []>} : vector<64x128xf32>, vector<128x128xf32>, vector<64x128xf32> -> vector<64x128xf32>
    %137 = arith.addf %122, %136 : vector<64x128xf32>
    %138 = vector.extract_strided_slice %1 {offsets = [0, 9], sizes = [64, 1], strides = [1, 1]} : vector<64x27xi32> to vector<64x1xi32>
    %139 = vector.shape_cast %138 : vector<64x1xi32> to vector<64x1xi32>
    %140 = vector.broadcast %139 : vector<64x1xi32> to vector<64x128xi32>
    %c0_i32_47 = arith.constant 0 : i32
    %141 = vector.broadcast %c0_i32_47 : i32 to vector<64x128xi32>
    %142 = arith.cmpi slt, %140, %141 : vector<64x128xi32>
    %c72_i32_48 = arith.constant 72 : i32
    %143 = vector.broadcast %c72_i32_48 : i32 to vector<64x128xi32>
    %144 = arith.addi %140, %143 : vector<64x128xi32>
    %145 = arith.select %142, %144, %140 : vector<64x128xi1>, vector<64x128xi32>
    %146 = vector.shape_cast %145 : vector<64x128xi32> to vector<64x128x1xi32>
    %147 = vector.shape_cast %146 : vector<64x128x1xi32> to vector<64x128xi32>
    %148 = tpu.dynamic_gather %0[%147] in [0] : vector<72x128xf32>, vector<64x128xi32> -> vector<64x128xf32>
    %c9 = arith.constant 9 : index
    %c0_49 = arith.constant 0 : index
    %c0_50 = arith.constant 0 : index
    %149 = vector.load %arg3[%c9, %c0_49, %c0_50] : memref<27x128x128xf32, #tpu.memory_space<vmem>>, vector<1x128x128xf32>
    %150 = vector.shape_cast %149 : vector<1x128x128xf32> to vector<128x128xf32>
    %cst_51 = arith.constant dense<0.000000e+00> : vector<64x128xf32>
    %151 = tpu.matmul %148, %150, %cst_51 {dimension_numbers = #tpu.dot_dimension_numbers<[1], [0], [0], [1], [0, 0, 1, 1], [], []>} : vector<64x128xf32>, vector<128x128xf32>, vector<64x128xf32> -> vector<64x128xf32>
    %152 = arith.addf %137, %151 : vector<64x128xf32>
    %153 = vector.extract_strided_slice %1 {offsets = [0, 10], sizes = [64, 1], strides = [1, 1]} : vector<64x27xi32> to vector<64x1xi32>
    %154 = vector.shape_cast %153 : vector<64x1xi32> to vector<64x1xi32>
    %155 = vector.broadcast %154 : vector<64x1xi32> to vector<64x128xi32>
    %c0_i32_52 = arith.constant 0 : i32
    %156 = vector.broadcast %c0_i32_52 : i32 to vector<64x128xi32>
    %157 = arith.cmpi slt, %155, %156 : vector<64x128xi32>
    %c72_i32_53 = arith.constant 72 : i32
    %158 = vector.broadcast %c72_i32_53 : i32 to vector<64x128xi32>
    %159 = arith.addi %155, %158 : vector<64x128xi32>
    %160 = arith.select %157, %159, %155 : vector<64x128xi1>, vector<64x128xi32>
    %161 = vector.shape_cast %160 : vector<64x128xi32> to vector<64x128x1xi32>
    %162 = vector.shape_cast %161 : vector<64x128x1xi32> to vector<64x128xi32>
    %163 = tpu.dynamic_gather %0[%162] in [0] : vector<72x128xf32>, vector<64x128xi32> -> vector<64x128xf32>
    %c10 = arith.constant 10 : index
    %c0_54 = arith.constant 0 : index
    %c0_55 = arith.constant 0 : index
    %164 = vector.load %arg3[%c10, %c0_54, %c0_55] : memref<27x128x128xf32, #tpu.memory_space<vmem>>, vector<1x128x128xf32>
    %165 = vector.shape_cast %164 : vector<1x128x128xf32> to vector<128x128xf32>
    %cst_56 = arith.constant dense<0.000000e+00> : vector<64x128xf32>
    %166 = tpu.matmul %163, %165, %cst_56 {dimension_numbers = #tpu.dot_dimension_numbers<[1], [0], [0], [1], [0, 0, 1, 1], [], []>} : vector<64x128xf32>, vector<128x128xf32>, vector<64x128xf32> -> vector<64x128xf32>
    %167 = arith.addf %152, %166 : vector<64x128xf32>
    %168 = vector.extract_strided_slice %1 {offsets = [0, 11], sizes = [64, 1], strides = [1, 1]} : vector<64x27xi32> to vector<64x1xi32>
    %169 = vector.shape_cast %168 : vector<64x1xi32> to vector<64x1xi32>
    %170 = vector.broadcast %169 : vector<64x1xi32> to vector<64x128xi32>
    %c0_i32_57 = arith.constant 0 : i32
    %171 = vector.broadcast %c0_i32_57 : i32 to vector<64x128xi32>
    %172 = arith.cmpi slt, %170, %171 : vector<64x128xi32>
    %c72_i32_58 = arith.constant 72 : i32
    %173 = vector.broadcast %c72_i32_58 : i32 to vector<64x128xi32>
    %174 = arith.addi %170, %173 : vector<64x128xi32>
    %175 = arith.select %172, %174, %170 : vector<64x128xi1>, vector<64x128xi32>
    %176 = vector.shape_cast %175 : vector<64x128xi32> to vector<64x128x1xi32>
    %177 = vector.shape_cast %176 : vector<64x128x1xi32> to vector<64x128xi32>
    %178 = tpu.dynamic_gather %0[%177] in [0] : vector<72x128xf32>, vector<64x128xi32> -> vector<64x128xf32>
    %c11 = arith.constant 11 : index
    %c0_59 = arith.constant 0 : index
    %c0_60 = arith.constant 0 : index
    %179 = vector.load %arg3[%c11, %c0_59, %c0_60] : memref<27x128x128xf32, #tpu.memory_space<vmem>>, vector<1x128x128xf32>
    %180 = vector.shape_cast %179 : vector<1x128x128xf32> to vector<128x128xf32>
    %cst_61 = arith.constant dense<0.000000e+00> : vector<64x128xf32>
    %181 = tpu.matmul %178, %180, %cst_61 {dimension_numbers = #tpu.dot_dimension_numbers<[1], [0], [0], [1], [0, 0, 1, 1], [], []>} : vector<64x128xf32>, vector<128x128xf32>, vector<64x128xf32> -> vector<64x128xf32>
    %182 = arith.addf %167, %181 : vector<64x128xf32>
    %183 = vector.extract_strided_slice %1 {offsets = [0, 12], sizes = [64, 1], strides = [1, 1]} : vector<64x27xi32> to vector<64x1xi32>
    %184 = vector.shape_cast %183 : vector<64x1xi32> to vector<64x1xi32>
    %185 = vector.broadcast %184 : vector<64x1xi32> to vector<64x128xi32>
    %c0_i32_62 = arith.constant 0 : i32
    %186 = vector.broadcast %c0_i32_62 : i32 to vector<64x128xi32>
    %187 = arith.cmpi slt, %185, %186 : vector<64x128xi32>
    %c72_i32_63 = arith.constant 72 : i32
    %188 = vector.broadcast %c72_i32_63 : i32 to vector<64x128xi32>
    %189 = arith.addi %185, %188 : vector<64x128xi32>
    %190 = arith.select %187, %189, %185 : vector<64x128xi1>, vector<64x128xi32>
    %191 = vector.shape_cast %190 : vector<64x128xi32> to vector<64x128x1xi32>
    %192 = vector.shape_cast %191 : vector<64x128x1xi32> to vector<64x128xi32>
    %193 = tpu.dynamic_gather %0[%192] in [0] : vector<72x128xf32>, vector<64x128xi32> -> vector<64x128xf32>
    %c12 = arith.constant 12 : index
    %c0_64 = arith.constant 0 : index
    %c0_65 = arith.constant 0 : index
    %194 = vector.load %arg3[%c12, %c0_64, %c0_65] : memref<27x128x128xf32, #tpu.memory_space<vmem>>, vector<1x128x128xf32>
    %195 = vector.shape_cast %194 : vector<1x128x128xf32> to vector<128x128xf32>
    %cst_66 = arith.constant dense<0.000000e+00> : vector<64x128xf32>
    %196 = tpu.matmul %193, %195, %cst_66 {dimension_numbers = #tpu.dot_dimension_numbers<[1], [0], [0], [1], [0, 0, 1, 1], [], []>} : vector<64x128xf32>, vector<128x128xf32>, vector<64x128xf32> -> vector<64x128xf32>
    %197 = arith.addf %182, %196 : vector<64x128xf32>
    %198 = vector.extract_strided_slice %1 {offsets = [0, 13], sizes = [64, 1], strides = [1, 1]} : vector<64x27xi32> to vector<64x1xi32>
    %199 = vector.shape_cast %198 : vector<64x1xi32> to vector<64x1xi32>
    %200 = vector.broadcast %199 : vector<64x1xi32> to vector<64x128xi32>
    %c0_i32_67 = arith.constant 0 : i32
    %201 = vector.broadcast %c0_i32_67 : i32 to vector<64x128xi32>
    %202 = arith.cmpi slt, %200, %201 : vector<64x128xi32>
    %c72_i32_68 = arith.constant 72 : i32
    %203 = vector.broadcast %c72_i32_68 : i32 to vector<64x128xi32>
    %204 = arith.addi %200, %203 : vector<64x128xi32>
    %205 = arith.select %202, %204, %200 : vector<64x128xi1>, vector<64x128xi32>
    %206 = vector.shape_cast %205 : vector<64x128xi32> to vector<64x128x1xi32>
    %207 = vector.shape_cast %206 : vector<64x128x1xi32> to vector<64x128xi32>
    %208 = tpu.dynamic_gather %0[%207] in [0] : vector<72x128xf32>, vector<64x128xi32> -> vector<64x128xf32>
    %c13 = arith.constant 13 : index
    %c0_69 = arith.constant 0 : index
    %c0_70 = arith.constant 0 : index
    %209 = vector.load %arg3[%c13, %c0_69, %c0_70] : memref<27x128x128xf32, #tpu.memory_space<vmem>>, vector<1x128x128xf32>
    %210 = vector.shape_cast %209 : vector<1x128x128xf32> to vector<128x128xf32>
    %cst_71 = arith.constant dense<0.000000e+00> : vector<64x128xf32>
    %211 = tpu.matmul %208, %210, %cst_71 {dimension_numbers = #tpu.dot_dimension_numbers<[1], [0], [0], [1], [0, 0, 1, 1], [], []>} : vector<64x128xf32>, vector<128x128xf32>, vector<64x128xf32> -> vector<64x128xf32>
    %212 = arith.addf %197, %211 : vector<64x128xf32>
    %213 = vector.extract_strided_slice %1 {offsets = [0, 14], sizes = [64, 1], strides = [1, 1]} : vector<64x27xi32> to vector<64x1xi32>
    %214 = vector.shape_cast %213 : vector<64x1xi32> to vector<64x1xi32>
    %215 = vector.broadcast %214 : vector<64x1xi32> to vector<64x128xi32>
    %c0_i32_72 = arith.constant 0 : i32
    %216 = vector.broadcast %c0_i32_72 : i32 to vector<64x128xi32>
    %217 = arith.cmpi slt, %215, %216 : vector<64x128xi32>
    %c72_i32_73 = arith.constant 72 : i32
    %218 = vector.broadcast %c72_i32_73 : i32 to vector<64x128xi32>
    %219 = arith.addi %215, %218 : vector<64x128xi32>
    %220 = arith.select %217, %219, %215 : vector<64x128xi1>, vector<64x128xi32>
    %221 = vector.shape_cast %220 : vector<64x128xi32> to vector<64x128x1xi32>
    %222 = vector.shape_cast %221 : vector<64x128x1xi32> to vector<64x128xi32>
    %223 = tpu.dynamic_gather %0[%222] in [0] : vector<72x128xf32>, vector<64x128xi32> -> vector<64x128xf32>
    %c14 = arith.constant 14 : index
    %c0_74 = arith.constant 0 : index
    %c0_75 = arith.constant 0 : index
    %224 = vector.load %arg3[%c14, %c0_74, %c0_75] : memref<27x128x128xf32, #tpu.memory_space<vmem>>, vector<1x128x128xf32>
    %225 = vector.shape_cast %224 : vector<1x128x128xf32> to vector<128x128xf32>
    %cst_76 = arith.constant dense<0.000000e+00> : vector<64x128xf32>
    %226 = tpu.matmul %223, %225, %cst_76 {dimension_numbers = #tpu.dot_dimension_numbers<[1], [0], [0], [1], [0, 0, 1, 1], [], []>} : vector<64x128xf32>, vector<128x128xf32>, vector<64x128xf32> -> vector<64x128xf32>
    %227 = arith.addf %212, %226 : vector<64x128xf32>
    %228 = vector.extract_strided_slice %1 {offsets = [0, 15], sizes = [64, 1], strides = [1, 1]} : vector<64x27xi32> to vector<64x1xi32>
    %229 = vector.shape_cast %228 : vector<64x1xi32> to vector<64x1xi32>
    %230 = vector.broadcast %229 : vector<64x1xi32> to vector<64x128xi32>
    %c0_i32_77 = arith.constant 0 : i32
    %231 = vector.broadcast %c0_i32_77 : i32 to vector<64x128xi32>
    %232 = arith.cmpi slt, %230, %231 : vector<64x128xi32>
    %c72_i32_78 = arith.constant 72 : i32
    %233 = vector.broadcast %c72_i32_78 : i32 to vector<64x128xi32>
    %234 = arith.addi %230, %233 : vector<64x128xi32>
    %235 = arith.select %232, %234, %230 : vector<64x128xi1>, vector<64x128xi32>
    %236 = vector.shape_cast %235 : vector<64x128xi32> to vector<64x128x1xi32>
    %237 = vector.shape_cast %236 : vector<64x128x1xi32> to vector<64x128xi32>
    %238 = tpu.dynamic_gather %0[%237] in [0] : vector<72x128xf32>, vector<64x128xi32> -> vector<64x128xf32>
    %c15 = arith.constant 15 : index
    %c0_79 = arith.constant 0 : index
    %c0_80 = arith.constant 0 : index
    %239 = vector.load %arg3[%c15, %c0_79, %c0_80] : memref<27x128x128xf32, #tpu.memory_space<vmem>>, vector<1x128x128xf32>
    %240 = vector.shape_cast %239 : vector<1x128x128xf32> to vector<128x128xf32>
    %cst_81 = arith.constant dense<0.000000e+00> : vector<64x128xf32>
    %241 = tpu.matmul %238, %240, %cst_81 {dimension_numbers = #tpu.dot_dimension_numbers<[1], [0], [0], [1], [0, 0, 1, 1], [], []>} : vector<64x128xf32>, vector<128x128xf32>, vector<64x128xf32> -> vector<64x128xf32>
    %242 = arith.addf %227, %241 : vector<64x128xf32>
    %243 = vector.extract_strided_slice %1 {offsets = [0, 16], sizes = [64, 1], strides = [1, 1]} : vector<64x27xi32> to vector<64x1xi32>
    %244 = vector.shape_cast %243 : vector<64x1xi32> to vector<64x1xi32>
    %245 = vector.broadcast %244 : vector<64x1xi32> to vector<64x128xi32>
    %c0_i32_82 = arith.constant 0 : i32
    %246 = vector.broadcast %c0_i32_82 : i32 to vector<64x128xi32>
    %247 = arith.cmpi slt, %245, %246 : vector<64x128xi32>
    %c72_i32_83 = arith.constant 72 : i32
    %248 = vector.broadcast %c72_i32_83 : i32 to vector<64x128xi32>
    %249 = arith.addi %245, %248 : vector<64x128xi32>
    %250 = arith.select %247, %249, %245 : vector<64x128xi1>, vector<64x128xi32>
    %251 = vector.shape_cast %250 : vector<64x128xi32> to vector<64x128x1xi32>
    %252 = vector.shape_cast %251 : vector<64x128x1xi32> to vector<64x128xi32>
    %253 = tpu.dynamic_gather %0[%252] in [0] : vector<72x128xf32>, vector<64x128xi32> -> vector<64x128xf32>
    %c16 = arith.constant 16 : index
    %c0_84 = arith.constant 0 : index
    %c0_85 = arith.constant 0 : index
    %254 = vector.load %arg3[%c16, %c0_84, %c0_85] : memref<27x128x128xf32, #tpu.memory_space<vmem>>, vector<1x128x128xf32>
    %255 = vector.shape_cast %254 : vector<1x128x128xf32> to vector<128x128xf32>
    %cst_86 = arith.constant dense<0.000000e+00> : vector<64x128xf32>
    %256 = tpu.matmul %253, %255, %cst_86 {dimension_numbers = #tpu.dot_dimension_numbers<[1], [0], [0], [1], [0, 0, 1, 1], [], []>} : vector<64x128xf32>, vector<128x128xf32>, vector<64x128xf32> -> vector<64x128xf32>
    %257 = arith.addf %242, %256 : vector<64x128xf32>
    %258 = vector.extract_strided_slice %1 {offsets = [0, 17], sizes = [64, 1], strides = [1, 1]} : vector<64x27xi32> to vector<64x1xi32>
    %259 = vector.shape_cast %258 : vector<64x1xi32> to vector<64x1xi32>
    %260 = vector.broadcast %259 : vector<64x1xi32> to vector<64x128xi32>
    %c0_i32_87 = arith.constant 0 : i32
    %261 = vector.broadcast %c0_i32_87 : i32 to vector<64x128xi32>
    %262 = arith.cmpi slt, %260, %261 : vector<64x128xi32>
    %c72_i32_88 = arith.constant 72 : i32
    %263 = vector.broadcast %c72_i32_88 : i32 to vector<64x128xi32>
    %264 = arith.addi %260, %263 : vector<64x128xi32>
    %265 = arith.select %262, %264, %260 : vector<64x128xi1>, vector<64x128xi32>
    %266 = vector.shape_cast %265 : vector<64x128xi32> to vector<64x128x1xi32>
    %267 = vector.shape_cast %266 : vector<64x128x1xi32> to vector<64x128xi32>
    %268 = tpu.dynamic_gather %0[%267] in [0] : vector<72x128xf32>, vector<64x128xi32> -> vector<64x128xf32>
    %c17 = arith.constant 17 : index
    %c0_89 = arith.constant 0 : index
    %c0_90 = arith.constant 0 : index
    %269 = vector.load %arg3[%c17, %c0_89, %c0_90] : memref<27x128x128xf32, #tpu.memory_space<vmem>>, vector<1x128x128xf32>
    %270 = vector.shape_cast %269 : vector<1x128x128xf32> to vector<128x128xf32>
    %cst_91 = arith.constant dense<0.000000e+00> : vector<64x128xf32>
    %271 = tpu.matmul %268, %270, %cst_91 {dimension_numbers = #tpu.dot_dimension_numbers<[1], [0], [0], [1], [0, 0, 1, 1], [], []>} : vector<64x128xf32>, vector<128x128xf32>, vector<64x128xf32> -> vector<64x128xf32>
    %272 = arith.addf %257, %271 : vector<64x128xf32>
    %273 = vector.extract_strided_slice %1 {offsets = [0, 18], sizes = [64, 1], strides = [1, 1]} : vector<64x27xi32> to vector<64x1xi32>
    %274 = vector.shape_cast %273 : vector<64x1xi32> to vector<64x1xi32>
    %275 = vector.broadcast %274 : vector<64x1xi32> to vector<64x128xi32>
    %c0_i32_92 = arith.constant 0 : i32
    %276 = vector.broadcast %c0_i32_92 : i32 to vector<64x128xi32>
    %277 = arith.cmpi slt, %275, %276 : vector<64x128xi32>
    %c72_i32_93 = arith.constant 72 : i32
    %278 = vector.broadcast %c72_i32_93 : i32 to vector<64x128xi32>
    %279 = arith.addi %275, %278 : vector<64x128xi32>
    %280 = arith.select %277, %279, %275 : vector<64x128xi1>, vector<64x128xi32>
    %281 = vector.shape_cast %280 : vector<64x128xi32> to vector<64x128x1xi32>
    %282 = vector.shape_cast %281 : vector<64x128x1xi32> to vector<64x128xi32>
    %283 = tpu.dynamic_gather %0[%282] in [0] : vector<72x128xf32>, vector<64x128xi32> -> vector<64x128xf32>
    %c18 = arith.constant 18 : index
    %c0_94 = arith.constant 0 : index
    %c0_95 = arith.constant 0 : index
    %284 = vector.load %arg3[%c18, %c0_94, %c0_95] : memref<27x128x128xf32, #tpu.memory_space<vmem>>, vector<1x128x128xf32>
    %285 = vector.shape_cast %284 : vector<1x128x128xf32> to vector<128x128xf32>
    %cst_96 = arith.constant dense<0.000000e+00> : vector<64x128xf32>
    %286 = tpu.matmul %283, %285, %cst_96 {dimension_numbers = #tpu.dot_dimension_numbers<[1], [0], [0], [1], [0, 0, 1, 1], [], []>} : vector<64x128xf32>, vector<128x128xf32>, vector<64x128xf32> -> vector<64x128xf32>
    %287 = arith.addf %272, %286 : vector<64x128xf32>
    %288 = vector.extract_strided_slice %1 {offsets = [0, 19], sizes = [64, 1], strides = [1, 1]} : vector<64x27xi32> to vector<64x1xi32>
    %289 = vector.shape_cast %288 : vector<64x1xi32> to vector<64x1xi32>
    %290 = vector.broadcast %289 : vector<64x1xi32> to vector<64x128xi32>
    %c0_i32_97 = arith.constant 0 : i32
    %291 = vector.broadcast %c0_i32_97 : i32 to vector<64x128xi32>
    %292 = arith.cmpi slt, %290, %291 : vector<64x128xi32>
    %c72_i32_98 = arith.constant 72 : i32
    %293 = vector.broadcast %c72_i32_98 : i32 to vector<64x128xi32>
    %294 = arith.addi %290, %293 : vector<64x128xi32>
    %295 = arith.select %292, %294, %290 : vector<64x128xi1>, vector<64x128xi32>
    %296 = vector.shape_cast %295 : vector<64x128xi32> to vector<64x128x1xi32>
    %297 = vector.shape_cast %296 : vector<64x128x1xi32> to vector<64x128xi32>
    %298 = tpu.dynamic_gather %0[%297] in [0] : vector<72x128xf32>, vector<64x128xi32> -> vector<64x128xf32>
    %c19 = arith.constant 19 : index
    %c0_99 = arith.constant 0 : index
    %c0_100 = arith.constant 0 : index
    %299 = vector.load %arg3[%c19, %c0_99, %c0_100] : memref<27x128x128xf32, #tpu.memory_space<vmem>>, vector<1x128x128xf32>
    %300 = vector.shape_cast %299 : vector<1x128x128xf32> to vector<128x128xf32>
    %cst_101 = arith.constant dense<0.000000e+00> : vector<64x128xf32>
    %301 = tpu.matmul %298, %300, %cst_101 {dimension_numbers = #tpu.dot_dimension_numbers<[1], [0], [0], [1], [0, 0, 1, 1], [], []>} : vector<64x128xf32>, vector<128x128xf32>, vector<64x128xf32> -> vector<64x128xf32>
    %302 = arith.addf %287, %301 : vector<64x128xf32>
    %303 = vector.extract_strided_slice %1 {offsets = [0, 20], sizes = [64, 1], strides = [1, 1]} : vector<64x27xi32> to vector<64x1xi32>
    %304 = vector.shape_cast %303 : vector<64x1xi32> to vector<64x1xi32>
    %305 = vector.broadcast %304 : vector<64x1xi32> to vector<64x128xi32>
    %c0_i32_102 = arith.constant 0 : i32
    %306 = vector.broadcast %c0_i32_102 : i32 to vector<64x128xi32>
    %307 = arith.cmpi slt, %305, %306 : vector<64x128xi32>
    %c72_i32_103 = arith.constant 72 : i32
    %308 = vector.broadcast %c72_i32_103 : i32 to vector<64x128xi32>
    %309 = arith.addi %305, %308 : vector<64x128xi32>
    %310 = arith.select %307, %309, %305 : vector<64x128xi1>, vector<64x128xi32>
    %311 = vector.shape_cast %310 : vector<64x128xi32> to vector<64x128x1xi32>
    %312 = vector.shape_cast %311 : vector<64x128x1xi32> to vector<64x128xi32>
    %313 = tpu.dynamic_gather %0[%312] in [0] : vector<72x128xf32>, vector<64x128xi32> -> vector<64x128xf32>
    %c20 = arith.constant 20 : index
    %c0_104 = arith.constant 0 : index
    %c0_105 = arith.constant 0 : index
    %314 = vector.load %arg3[%c20, %c0_104, %c0_105] : memref<27x128x128xf32, #tpu.memory_space<vmem>>, vector<1x128x128xf32>
    %315 = vector.shape_cast %314 : vector<1x128x128xf32> to vector<128x128xf32>
    %cst_106 = arith.constant dense<0.000000e+00> : vector<64x128xf32>
    %316 = tpu.matmul %313, %315, %cst_106 {dimension_numbers = #tpu.dot_dimension_numbers<[1], [0], [0], [1], [0, 0, 1, 1], [], []>} : vector<64x128xf32>, vector<128x128xf32>, vector<64x128xf32> -> vector<64x128xf32>
    %317 = arith.addf %302, %316 : vector<64x128xf32>
    %318 = vector.extract_strided_slice %1 {offsets = [0, 21], sizes = [64, 1], strides = [1, 1]} : vector<64x27xi32> to vector<64x1xi32>
    %319 = vector.shape_cast %318 : vector<64x1xi32> to vector<64x1xi32>
    %320 = vector.broadcast %319 : vector<64x1xi32> to vector<64x128xi32>
    %c0_i32_107 = arith.constant 0 : i32
    %321 = vector.broadcast %c0_i32_107 : i32 to vector<64x128xi32>
    %322 = arith.cmpi slt, %320, %321 : vector<64x128xi32>
    %c72_i32_108 = arith.constant 72 : i32
    %323 = vector.broadcast %c72_i32_108 : i32 to vector<64x128xi32>
    %324 = arith.addi %320, %323 : vector<64x128xi32>
    %325 = arith.select %322, %324, %320 : vector<64x128xi1>, vector<64x128xi32>
    %326 = vector.shape_cast %325 : vector<64x128xi32> to vector<64x128x1xi32>
    %327 = vector.shape_cast %326 : vector<64x128x1xi32> to vector<64x128xi32>
    %328 = tpu.dynamic_gather %0[%327] in [0] : vector<72x128xf32>, vector<64x128xi32> -> vector<64x128xf32>
    %c21 = arith.constant 21 : index
    %c0_109 = arith.constant 0 : index
    %c0_110 = arith.constant 0 : index
    %329 = vector.load %arg3[%c21, %c0_109, %c0_110] : memref<27x128x128xf32, #tpu.memory_space<vmem>>, vector<1x128x128xf32>
    %330 = vector.shape_cast %329 : vector<1x128x128xf32> to vector<128x128xf32>
    %cst_111 = arith.constant dense<0.000000e+00> : vector<64x128xf32>
    %331 = tpu.matmul %328, %330, %cst_111 {dimension_numbers = #tpu.dot_dimension_numbers<[1], [0], [0], [1], [0, 0, 1, 1], [], []>} : vector<64x128xf32>, vector<128x128xf32>, vector<64x128xf32> -> vector<64x128xf32>
    %332 = arith.addf %317, %331 : vector<64x128xf32>
    %333 = vector.extract_strided_slice %1 {offsets = [0, 22], sizes = [64, 1], strides = [1, 1]} : vector<64x27xi32> to vector<64x1xi32>
    %334 = vector.shape_cast %333 : vector<64x1xi32> to vector<64x1xi32>
    %335 = vector.broadcast %334 : vector<64x1xi32> to vector<64x128xi32>
    %c0_i32_112 = arith.constant 0 : i32
    %336 = vector.broadcast %c0_i32_112 : i32 to vector<64x128xi32>
    %337 = arith.cmpi slt, %335, %336 : vector<64x128xi32>
    %c72_i32_113 = arith.constant 72 : i32
    %338 = vector.broadcast %c72_i32_113 : i32 to vector<64x128xi32>
    %339 = arith.addi %335, %338 : vector<64x128xi32>
    %340 = arith.select %337, %339, %335 : vector<64x128xi1>, vector<64x128xi32>
    %341 = vector.shape_cast %340 : vector<64x128xi32> to vector<64x128x1xi32>
    %342 = vector.shape_cast %341 : vector<64x128x1xi32> to vector<64x128xi32>
    %343 = tpu.dynamic_gather %0[%342] in [0] : vector<72x128xf32>, vector<64x128xi32> -> vector<64x128xf32>
    %c22 = arith.constant 22 : index
    %c0_114 = arith.constant 0 : index
    %c0_115 = arith.constant 0 : index
    %344 = vector.load %arg3[%c22, %c0_114, %c0_115] : memref<27x128x128xf32, #tpu.memory_space<vmem>>, vector<1x128x128xf32>
    %345 = vector.shape_cast %344 : vector<1x128x128xf32> to vector<128x128xf32>
    %cst_116 = arith.constant dense<0.000000e+00> : vector<64x128xf32>
    %346 = tpu.matmul %343, %345, %cst_116 {dimension_numbers = #tpu.dot_dimension_numbers<[1], [0], [0], [1], [0, 0, 1, 1], [], []>} : vector<64x128xf32>, vector<128x128xf32>, vector<64x128xf32> -> vector<64x128xf32>
    %347 = arith.addf %332, %346 : vector<64x128xf32>
    %348 = vector.extract_strided_slice %1 {offsets = [0, 23], sizes = [64, 1], strides = [1, 1]} : vector<64x27xi32> to vector<64x1xi32>
    %349 = vector.shape_cast %348 : vector<64x1xi32> to vector<64x1xi32>
    %350 = vector.broadcast %349 : vector<64x1xi32> to vector<64x128xi32>
    %c0_i32_117 = arith.constant 0 : i32
    %351 = vector.broadcast %c0_i32_117 : i32 to vector<64x128xi32>
    %352 = arith.cmpi slt, %350, %351 : vector<64x128xi32>
    %c72_i32_118 = arith.constant 72 : i32
    %353 = vector.broadcast %c72_i32_118 : i32 to vector<64x128xi32>
    %354 = arith.addi %350, %353 : vector<64x128xi32>
    %355 = arith.select %352, %354, %350 : vector<64x128xi1>, vector<64x128xi32>
    %356 = vector.shape_cast %355 : vector<64x128xi32> to vector<64x128x1xi32>
    %357 = vector.shape_cast %356 : vector<64x128x1xi32> to vector<64x128xi32>
    %358 = tpu.dynamic_gather %0[%357] in [0] : vector<72x128xf32>, vector<64x128xi32> -> vector<64x128xf32>
    %c23 = arith.constant 23 : index
    %c0_119 = arith.constant 0 : index
    %c0_120 = arith.constant 0 : index
    %359 = vector.load %arg3[%c23, %c0_119, %c0_120] : memref<27x128x128xf32, #tpu.memory_space<vmem>>, vector<1x128x128xf32>
    %360 = vector.shape_cast %359 : vector<1x128x128xf32> to vector<128x128xf32>
    %cst_121 = arith.constant dense<0.000000e+00> : vector<64x128xf32>
    %361 = tpu.matmul %358, %360, %cst_121 {dimension_numbers = #tpu.dot_dimension_numbers<[1], [0], [0], [1], [0, 0, 1, 1], [], []>} : vector<64x128xf32>, vector<128x128xf32>, vector<64x128xf32> -> vector<64x128xf32>
    %362 = arith.addf %347, %361 : vector<64x128xf32>
    %363 = vector.extract_strided_slice %1 {offsets = [0, 24], sizes = [64, 1], strides = [1, 1]} : vector<64x27xi32> to vector<64x1xi32>
    %364 = vector.shape_cast %363 : vector<64x1xi32> to vector<64x1xi32>
    %365 = vector.broadcast %364 : vector<64x1xi32> to vector<64x128xi32>
    %c0_i32_122 = arith.constant 0 : i32
    %366 = vector.broadcast %c0_i32_122 : i32 to vector<64x128xi32>
    %367 = arith.cmpi slt, %365, %366 : vector<64x128xi32>
    %c72_i32_123 = arith.constant 72 : i32
    %368 = vector.broadcast %c72_i32_123 : i32 to vector<64x128xi32>
    %369 = arith.addi %365, %368 : vector<64x128xi32>
    %370 = arith.select %367, %369, %365 : vector<64x128xi1>, vector<64x128xi32>
    %371 = vector.shape_cast %370 : vector<64x128xi32> to vector<64x128x1xi32>
    %372 = vector.shape_cast %371 : vector<64x128x1xi32> to vector<64x128xi32>
    %373 = tpu.dynamic_gather %0[%372] in [0] : vector<72x128xf32>, vector<64x128xi32> -> vector<64x128xf32>
    %c24 = arith.constant 24 : index
    %c0_124 = arith.constant 0 : index
    %c0_125 = arith.constant 0 : index
    %374 = vector.load %arg3[%c24, %c0_124, %c0_125] : memref<27x128x128xf32, #tpu.memory_space<vmem>>, vector<1x128x128xf32>
    %375 = vector.shape_cast %374 : vector<1x128x128xf32> to vector<128x128xf32>
    %cst_126 = arith.constant dense<0.000000e+00> : vector<64x128xf32>
    %376 = tpu.matmul %373, %375, %cst_126 {dimension_numbers = #tpu.dot_dimension_numbers<[1], [0], [0], [1], [0, 0, 1, 1], [], []>} : vector<64x128xf32>, vector<128x128xf32>, vector<64x128xf32> -> vector<64x128xf32>
    %377 = arith.addf %362, %376 : vector<64x128xf32>
    %378 = vector.extract_strided_slice %1 {offsets = [0, 25], sizes = [64, 1], strides = [1, 1]} : vector<64x27xi32> to vector<64x1xi32>
    %379 = vector.shape_cast %378 : vector<64x1xi32> to vector<64x1xi32>
    %380 = vector.broadcast %379 : vector<64x1xi32> to vector<64x128xi32>
    %c0_i32_127 = arith.constant 0 : i32
    %381 = vector.broadcast %c0_i32_127 : i32 to vector<64x128xi32>
    %382 = arith.cmpi slt, %380, %381 : vector<64x128xi32>
    %c72_i32_128 = arith.constant 72 : i32
    %383 = vector.broadcast %c72_i32_128 : i32 to vector<64x128xi32>
    %384 = arith.addi %380, %383 : vector<64x128xi32>
    %385 = arith.select %382, %384, %380 : vector<64x128xi1>, vector<64x128xi32>
    %386 = vector.shape_cast %385 : vector<64x128xi32> to vector<64x128x1xi32>
    %387 = vector.shape_cast %386 : vector<64x128x1xi32> to vector<64x128xi32>
    %388 = tpu.dynamic_gather %0[%387] in [0] : vector<72x128xf32>, vector<64x128xi32> -> vector<64x128xf32>
    %c25 = arith.constant 25 : index
    %c0_129 = arith.constant 0 : index
    %c0_130 = arith.constant 0 : index
    %389 = vector.load %arg3[%c25, %c0_129, %c0_130] : memref<27x128x128xf32, #tpu.memory_space<vmem>>, vector<1x128x128xf32>
    %390 = vector.shape_cast %389 : vector<1x128x128xf32> to vector<128x128xf32>
    %cst_131 = arith.constant dense<0.000000e+00> : vector<64x128xf32>
    %391 = tpu.matmul %388, %390, %cst_131 {dimension_numbers = #tpu.dot_dimension_numbers<[1], [0], [0], [1], [0, 0, 1, 1], [], []>} : vector<64x128xf32>, vector<128x128xf32>, vector<64x128xf32> -> vector<64x128xf32>
    %392 = arith.addf %377, %391 : vector<64x128xf32>
    %393 = vector.extract_strided_slice %1 {offsets = [0, 26], sizes = [64, 1], strides = [1, 1]} : vector<64x27xi32> to vector<64x1xi32>
    %394 = vector.shape_cast %393 : vector<64x1xi32> to vector<64x1xi32>
    %395 = vector.broadcast %394 : vector<64x1xi32> to vector<64x128xi32>
    %c0_i32_132 = arith.constant 0 : i32
    %396 = vector.broadcast %c0_i32_132 : i32 to vector<64x128xi32>
    %397 = arith.cmpi slt, %395, %396 : vector<64x128xi32>
    %c72_i32_133 = arith.constant 72 : i32
    %398 = vector.broadcast %c72_i32_133 : i32 to vector<64x128xi32>
    %399 = arith.addi %395, %398 : vector<64x128xi32>
    %400 = arith.select %397, %399, %395 : vector<64x128xi1>, vector<64x128xi32>
    %401 = vector.shape_cast %400 : vector<64x128xi32> to vector<64x128x1xi32>
    %402 = vector.shape_cast %401 : vector<64x128x1xi32> to vector<64x128xi32>
    %403 = tpu.dynamic_gather %0[%402] in [0] : vector<72x128xf32>, vector<64x128xi32> -> vector<64x128xf32>
    %c26 = arith.constant 26 : index
    %c0_134 = arith.constant 0 : index
    %c0_135 = arith.constant 0 : index
    %404 = vector.load %arg3[%c26, %c0_134, %c0_135] : memref<27x128x128xf32, #tpu.memory_space<vmem>>, vector<1x128x128xf32>
    %405 = vector.shape_cast %404 : vector<1x128x128xf32> to vector<128x128xf32>
    %cst_136 = arith.constant dense<0.000000e+00> : vector<64x128xf32>
    %406 = tpu.matmul %403, %405, %cst_136 {dimension_numbers = #tpu.dot_dimension_numbers<[1], [0], [0], [1], [0, 0, 1, 1], [], []>} : vector<64x128xf32>, vector<128x128xf32>, vector<64x128xf32> -> vector<64x128xf32>
    %407 = arith.addf %392, %406 : vector<64x128xf32>
    %c0_137 = arith.constant 0 : index
    %c0_138 = arith.constant 0 : index
    %408 = vector.load %arg4[%c0_137, %c0_138] : memref<1x128xf32, #tpu.memory_space<vmem>>, vector<1x128xf32>
    %409 = vector.broadcast %408 : vector<1x128xf32> to vector<64x128xf32>
    %410 = arith.addf %407, %409 : vector<64x128xf32>
    %c0_139 = arith.constant 0 : index
    %c0_140 = arith.constant 0 : index
    %411 = vector.load %arg5[%c0_139, %c0_140] : memref<64x128xf32, #tpu.memory_space<vmem>>, vector<64x128xf32>
    tpu.vector_store %arg5[%c0_139, %c0_140], %410 {strides = array<i32>} : memref<64x128xf32, #tpu.memory_space<vmem>>, vector<64x128xf32>,
    return
  }
  func.func @transform_0(%arg0: i32) -> (i32, i32) {
    %c0_i32 = arith.constant 0 : i32
    %c0_i32_0 = arith.constant 0 : i32
    return %arg0, %c0_i32 : i32, i32
  }
  func.func @transform_1(%arg0: i32) -> (i32, i32) {
    %c0_i32 = arith.constant 0 : i32
    %c0_i32_0 = arith.constant 0 : i32
    %c0_i32_1 = arith.constant 0 : i32
    return %c0_i32, %c0_i32_0 : i32, i32
  }
  func.func @transform_2(%arg0: i32) -> (i32, i32, i32) {
    %c0_i32 = arith.constant 0 : i32
    %c0_i32_0 = arith.constant 0 : i32
    %c0_i32_1 = arith.constant 0 : i32
    %c0_i32_2 = arith.constant 0 : i32
    return %c0_i32, %c0_i32_0, %c0_i32_1 : i32, i32, i32
  }
  func.func @transform_3(%arg0: i32) -> (i32, i32) {
    %c0_i32 = arith.constant 0 : i32
    %c0_i32_0 = arith.constant 0 : i32
    %c0_i32_1 = arith.constant 0 : i32
    return %c0_i32, %c0_i32_0 : i32, i32
  }
  func.func @transform_4(%arg0: i32) -> (i32, i32) {
    %c0_i32 = arith.constant 0 : i32
    %c0_i32_0 = arith.constant 0 : i32
    return %arg0, %c0_i32 : i32, i32
  }
}

module attributes {stable_mosaic.version = 11 : i64} {
  func.func @_folded_matmul_kernel(%arg0: i32, %arg1: memref<64x128xf32, #tpu.memory_space<vmem>>, %arg2: memref<128x128xf32, #tpu.memory_space<vmem>>, %arg3: memref<1x128xf32, #tpu.memory_space<vmem>>, %arg4: memref<64x128xf32, #tpu.memory_space<vmem>>) attributes {dimension_semantics = [#tpu.dimension_semantics<parallel>], iteration_bounds = array<i64: 1>, scalar_prefetch = 0 : i64, scratch_operands = 0 : i64, tpu.core_type = #tpu.core_type<tc>, window_params = [{transform_indices = @transform_0, window_bounds = array<i64: 64, 128>}, {pipeline_mode = #tpu.pipeline_mode<synchronous>, transform_indices = @transform_1, window_bounds = array<i64: 128, 128>}, {pipeline_mode = #tpu.pipeline_mode<synchronous>, transform_indices = @transform_2, window_bounds = array<i64: 1, 128>}, {transform_indices = @transform_3, window_bounds = array<i64: 64, 128>}]} {
    %c0 = arith.constant 0 : index
    %c0_0 = arith.constant 0 : index
    %0 = vector.load %arg1[%c0, %c0_0] : memref<64x128xf32, #tpu.memory_space<vmem>>, vector<64x128xf32>
    %c0_1 = arith.constant 0 : index
    %c0_2 = arith.constant 0 : index
    %1 = vector.load %arg2[%c0_1, %c0_2] : memref<128x128xf32, #tpu.memory_space<vmem>>, vector<128x128xf32>
    %cst = arith.constant dense<0.000000e+00> : vector<64x128xf32>
    %2 = tpu.matmul %0, %1, %cst {dimension_numbers = #tpu.dot_dimension_numbers<[1], [0], [0], [1], [0, 0, 1, 1], [], []>} : vector<64x128xf32>, vector<128x128xf32>, vector<64x128xf32> -> vector<64x128xf32>
    %c0_3 = arith.constant 0 : index
    %c0_4 = arith.constant 0 : index
    %3 = vector.load %arg3[%c0_3, %c0_4] : memref<1x128xf32, #tpu.memory_space<vmem>>, vector<1x128xf32>
    %4 = vector.broadcast %3 : vector<1x128xf32> to vector<64x128xf32>
    %5 = arith.addf %2, %4 : vector<64x128xf32>
    %c0_5 = arith.constant 0 : index
    %c0_6 = arith.constant 0 : index
    %6 = vector.load %arg4[%c0_5, %c0_6] : memref<64x128xf32, #tpu.memory_space<vmem>>, vector<64x128xf32>
    tpu.vector_store %arg4[%c0_5, %c0_6], %5 {strides = array<i32>} : memref<64x128xf32, #tpu.memory_space<vmem>>, vector<64x128xf32>,
    return
  }
  func.func @transform_0(%arg0: i32) -> (i32, i32) {
    %c0_i32 = arith.constant 0 : i32
    %c0_i32_0 = arith.constant 0 : i32
    return %arg0, %c0_i32 : i32, i32
  }
  func.func @transform_1(%arg0: i32) -> (i32, i32) {
    %c0_i32 = arith.constant 0 : i32
    %c0_i32_0 = arith.constant 0 : i32
    %c0_i32_1 = arith.constant 0 : i32
    return %c0_i32, %c0_i32_0 : i32, i32
  }
  func.func @transform_2(%arg0: i32) -> (i32, i32) {
    %c0_i32 = arith.constant 0 : i32
    %c0_i32_0 = arith.constant 0 : i32
    %c0_i32_1 = arith.constant 0 : i32
    return %c0_i32, %c0_i32_0 : i32, i32
  }
  func.func @transform_3(%arg0: i32) -> (i32, i32) {
    %c0_i32 = arith.constant 0 : i32
    %c0_i32_0 = arith.constant 0 : i32
    return %arg0, %c0_i32 : i32, i32
  }
}

</mosaic_0001>

<bundles_post_ra>
// kernel: tpu_custom_call.1
= control target key start
LH: loop header
LB: loop body
LE: loop exit
PB: predicated region body
PF: predicated region fallthrough
CT: control target
= control target key end

     0   :  { %8 = vsyncpa [#allocation3], 0  ;;  %s423_s0 = inlined_call_operand.hbm [shape: f32[64,128], index: 0, kind: input, shape index: {}]   ;;  %s424_s1 = inlined_call_operand.hbm [shape: f32[128,128], index: 1, kind: input, shape index: {}]   ;;  %s425_s2 = inlined_call_operand.vmem [shape: f32[1,128], index: 2, kind: input, shape index: {}]   ;;  %s426_s3 = inlined_call_operand.hbm [shape: f32[64,128], index: 3, kind: output, shape index: {}]  }
   0x1   :  { %9 = vsyncpa [#allocation6], 0 }
   0x2   :  { %10 = vsyncpa [#allocation4], 0  ;;  %s377_s12 = smov [#allocation2]  }
   0x3   :  { %s16_s13 = sshll.u32 %s377_s12, 4  ;;  %s17_s13 = int_to_ptr.vmem [resolvable:$true] %s16_s13 }
   0x4   :  { %s319_s14 = scalar_lea.vmem %s17_s13, 1024  ;;  %p324_p1 = scmp.lt.s32.totalorder %s17_s13, %s17_s13 }
   0x5   :  { %p320_p0 = scmp.ne.s32.totalorder %s17_s13, %s319_s14  ;;  %p325_p2 = scmp.lt.s32.totalorder %s319_s14, %s319_s14 }
   0x7   :  { %p326_p3 = por %p325_p2, %p324_p1 }
   0x9   :  { %p327_p4 = pnand %p326_p3, %p320_p0 }
   0xb   :  { %330 = shalt.err (!%p327_p4)
}
   0xc   :  { %s378_s15 = smov 128   ;;  %s379_s16 = smov 8  }
   0xd   :  { %22 = dma.hbm_to_vmem [thread:$0]  %s423_s0, 1024, %s17_s13, [#allocation3], %s378_s15, %s378_s15, %s379_s16  }
   0xe   :  { %s380_s19 = smov [#allocation5]  }
   0xf   :  { %s28_s20 = sshll.u32 %s380_s19, 4  ;;  %s29_s20 = int_to_ptr.vmem [resolvable:$true] %s28_s20 }
  0x10   :  { %s339_s21 = scalar_lea.vmem %s29_s20, 2048  ;;  %p344_p6 = scmp.lt.s32.totalorder %s29_s20, %s29_s20 }
  0x11   :  { %p340_p5 = scmp.ne.s32.totalorder %s29_s20, %s339_s21  ;;  %p345_p7 = scmp.lt.s32.totalorder %s339_s21, %s339_s21 }
  0x13   :  { %p346_p8 = por %p345_p7, %p344_p6 }
  0x15   :  { %p347_p9 = pnand %p346_p8, %p340_p5 }
  0x17   :  { %350 = shalt.err (!%p347_p9)
}
  0x18   :  { %34 = dma.hbm_to_vmem [thread:$0]  %s424_s1, 2048, %s29_s20, [#allocation6], %s378_s15, %s378_s15, %s379_s16  }
  0x19   :  { %371 = dma.done.wait [#allocation3], 1024  }
  0x1a   :  { %372 = vsyncadd [#allocation3], 4294966272 }
  0x1b   :  { %373 = dma.done.wait [#allocation6], 2048  }
  0x1c   :  { %374 = vsyncadd [#allocation6], 4294965248  ;;  %v66_v0 = vld [vmem:[#allocation5 + $0x78] sm:$0xff]  ;;  %v65_v1 = vld [vmem:[#allocation5 + $0x70] sm:$0xff]  ;;  %s381_s24 = smov [#allocation7]  }
  0x1d   :  { %230 = vmatprep.subr.mxu0 %v66_v0  ;;  %274 = vmatprep.subr.mxu1 %v66_v0  ;;  %v64_v2 = vld [vmem:[#allocation5 + $0x68] sm:$0xff]  ;;  %v63_v3 = vld [vmem:[#allocation5 + $0x60] sm:$0xff]  ;;  %v62_v4 = vld [vmem:[#allocation5 + $0x58] sm:$0xff]  ;;  %s192_s25 = sshll.u32 %s381_s24, 4  ;;  %s193_s25 = int_to_ptr.vmem [resolvable:$true] %s192_s25 }
  0x1e   :  { %231 = vmatpush3.msra.mxu0 %v66_v0  ;;  %290 = vmatpush3.msra.mxu1 %v66_v0  ;;  %v61_v5 = vld [vmem:[#allocation5 + $0x50] sm:$0xff]  ;;  %v60_v6 = vld [vmem:[#allocation5 + $0x48] sm:$0xff]  ;;  %v59_v7 = vld [vmem:[#allocation5 + $0x40] sm:$0xff]  ;;  %p356_p11 = scmp.lt.s32.totalorder %s193_s25, %s193_s25 }
  0x1f   :  { %232 = vmatprep.subr.mxu0 %v65_v1  ;;  %275 = vmatprep.subr.mxu1 %v65_v1  ;;  %v58_v8 = vld [vmem:[#allocation5 + $0x38] sm:$0xff]  ;;  %v57_v9 = vld [vmem:[#allocation5 + $0x30] sm:$0xff]  ;;  %v56_v10 = vld [vmem:[#allocation5 + $0x28] sm:$0xff] }
  0x20   :  { %233 = vmatpush3.msra.mxu0 %v65_v1  ;;  %291 = vmatpush3.msra.mxu1 %v65_v1  ;;  %v55_v11 = vld [vmem:[#allocation5 + $0x20] sm:$0xff]  ;;  %v54_v12 = vld [vmem:[#allocation5 + $0x18] sm:$0xff]  ;;  %v53_v13 = vld [vmem:[#allocation5 + $0x10] sm:$0xff] }
  0x21   :  { %234 = vmatprep.subr.mxu0 %v64_v2  ;;  %276 = vmatprep.subr.mxu1 %v64_v2  ;;  %v52_v14 = vld [vmem:[#allocation5 + $0x8] sm:$0xff]  ;;  %v51_v15 = vld [vmem:[#allocation5] sm:$0xff]  ;;  %v45_v20 = vld [vmem:[#allocation2 + $0x10] sm:$0xff] }
  0x22   :  { %235 = vmatpush3.msra.mxu0 %v64_v2  ;;  %292 = vmatpush3.msra.mxu1 %v64_v2  ;;  %v43_v16 = vld [vmem:[#allocation2] sm:$0xff]  ;;  %v44_v18 = vld [vmem:[#allocation2 + $0x8] sm:$0xff]  ;;  %v49_v21 = vld [vmem:[#allocation2 + $0x30] sm:$0xff] }
  0x23   :  { %236 = vmatprep.subr.mxu0 %v63_v3  ;;  %277 = vmatprep.subr.mxu1 %v63_v3  ;;  %v47_v17 = vld [vmem:[#allocation2 + $0x20] sm:$0xff]  ;;  %v48_v19 = vld [vmem:[#allocation2 + $0x28] sm:$0xff]  ;;  %v46_v22 = vld [vmem:[#allocation2 + $0x18] sm:$0xff] }
  0x24   :  { %237 = vmatpush3.msra.mxu0 %v63_v3  ;;  %293 = vmatpush3.msra.mxu1 %v63_v3  ;;  %v50_v23 = vld [vmem:[#allocation2 + $0x38] sm:$0xff]  ;;  %v205_v24 = vld [vmem:[%s425_s2] ss:$0 sm:$0xff]  ;;  %s351_s2 = scalar_lea.vmem %s193_s25, 1024 }
  0x25   :  { %238 = vmatprep.subr.mxu0 %v62_v4  ;;  %278 = vmatprep.subr.mxu1 %v62_v4  ;;  %p352_p10 = scmp.ne.s32.totalorder %s193_s25, %s351_s2  ;;  %p357_p12 = scmp.lt.s32.totalorder %s351_s2, %s351_s2 }
  0x26   :  { %239 = vmatpush3.msra.mxu0 %v62_v4  ;;  %294 = vmatpush3.msra.mxu1 %v62_v4 }
  0x27   :  { %240 = vmatprep.subr.mxu0 %v61_v5  ;;  %279 = vmatprep.subr.mxu1 %v61_v5  ;;  %p358_p13 = por %p357_p12, %p356_p11 }
  0x28   :  { %241 = vmatpush3.msra.mxu0 %v61_v5  ;;  %295 = vmatpush3.msra.mxu1 %v61_v5 }
  0x29   :  { %242 = vmatprep.subr.mxu0 %v60_v6  ;;  %280 = vmatprep.subr.mxu1 %v60_v6  ;;  %p359_p0 = pnand %p358_p13, %p352_p10 }
  0x2a   :  { %243 = vmatpush3.msra.mxu0 %v60_v6  ;;  %296 = vmatpush3.msra.mxu1 %v60_v6 }
  0x2b   :  { %244 = vmatprep.subr.mxu0 %v59_v7  ;;  %281 = vmatprep.subr.mxu1 %v59_v7 }
  0x2c   :  { %245 = vmatpush3.msra.mxu0 %v59_v7  ;;  %297 = vmatpush3.msra.mxu1 %v59_v7 }
  0x2d   :  { %246 = vmatprep.subr.mxu0 %v58_v8  ;;  %282 = vmatprep.subr.mxu1 %v58_v8 }
  0x2e   :  { %247 = vmatpush3.msra.mxu0 %v58_v8  ;;  %298 = vmatpush3.msra.mxu1 %v58_v8 }
  0x2f   :  { %248 = vmatprep.subr.mxu0 %v57_v9  ;;  %283 = vmatprep.subr.mxu1 %v57_v9 }
  0x30   :  { %249 = vmatpush3.msra.mxu0 %v57_v9  ;;  %299 = vmatpush3.msra.mxu1 %v57_v9 }
  0x31   :  { %250 = vmatprep.subr.mxu0 %v56_v10  ;;  %284 = vmatprep.subr.mxu1 %v56_v10 }
  0x32   :  { %251 = vmatpush3.msra.mxu0 %v56_v10  ;;  %300 = vmatpush3.msra.mxu1 %v56_v10 }
  0x33   :  { %252 = vmatprep.subr.mxu0 %v55_v11  ;;  %285 = vmatprep.subr.mxu1 %v55_v11 }
  0x34   :  { %253 = vmatpush3.msra.mxu0 %v55_v11  ;;  %301 = vmatpush3.msra.mxu1 %v55_v11 }
  0x35   :  { %254 = vmatprep.subr.mxu0 %v54_v12  ;;  %286 = vmatprep.subr.mxu1 %v54_v12 }
  0x36   :  { %255 = vmatpush3.msra.mxu0 %v54_v12  ;;  %302 = vmatpush3.msra.mxu1 %v54_v12 }
  0x37   :  { %256 = vmatprep.subr.mxu0 %v53_v13  ;;  %287 = vmatprep.subr.mxu1 %v53_v13 }
  0x38   :  { %257 = vmatpush3.msra.mxu0 %v53_v13  ;;  %303 = vmatpush3.msra.mxu1 %v53_v13 }
  0x39   :  { %258 = vmatprep.subr.mxu0 %v52_v14  ;;  %288 = vmatprep.subr.mxu1 %v52_v14 }
  0x3a   :  { %259 = vmatpush3.msra.mxu0 %v52_v14  ;;  %304 = vmatpush3.msra.mxu1 %v52_v14 }
  0x3b   :  { %260 = vmatprep.subr.mxu0 %v51_v15  ;;  %289 = vmatprep.subr.mxu1 %v51_v15 }
  0x3c   :  { %261 = vmatpush3.msra.mxu0 %v51_v15  ;;  %305 = vmatpush3.msra.mxu1 %v51_v15 }
  0x3d   :  { %262 = vmatprep.mubr.f32.mxu0 %v43_v16  ;;  %268 = vmatprep.mubr.f32.mxu1 %v47_v17 }
  0x3e   :  { %263 = vmatmul.mubr.f32.vlgmr.msra.gmra.mxu0 %v44_v18  ;;  %269 = vmatmul.mubr.f32.vlgmr.msra.gmra.mxu1 %v48_v19 }
  0x3f   :  { %265 = vmatprep.mubr.f32.mxu0 %v45_v20  ;;  %271 = vmatprep.mubr.f32.mxu1 %v49_v21 }
  0x42   :  { %266 = vmatmul.mubr.f32.gmra.mxu0 %v46_v22  ;;  %272 = vmatmul.mubr.f32.gmra.mxu1 %v50_v23 }
  0xfe   :  { %v264_v25 = vpop.f32.mrf.mxu0  ;;  %v270_v26 = vpop.f32.mrf.mxu1 }
  0xff   :  { %v146_v27 = vadd.f32 %v264_v25, %v205_v24  ;;  %v166_v28 = vadd.f32 %v270_v26, %v205_v24 }
 0x100   :  { %v140_v29 = vpop.f32.mrf.mxu0  ;;  %v160_v30 = vpop.f32.mrf.mxu1 }
 0x101   :  { %180 = vst [vmem:[#allocation7 + $0x8] sm:$0xff] %v146_v27  ;;  %184 = vst [vmem:[#allocation7 + $0x28] sm:$0xff] %v166_v28  ;;  %v141_v31 = vadd.f32 %v205_v24, %v140_v29  ;;  %v161_v32 = vadd.f32 %v205_v24, %v160_v30 }
 0x102   :  { %v267_v33 = vpop.f32.mrf.mxu0  ;;  %v273_v34 = vpop.f32.mrf.mxu1 }
 0x103   :  { %179 = vst [vmem:[#allocation7] sm:$0xff] %v141_v31  ;;  %183 = vst [vmem:[#allocation7 + $0x20] sm:$0xff] %v161_v32  ;;  %v156_v35 = vadd.f32 %v267_v33, %v205_v24  ;;  %v176_v36 = vadd.f32 %v273_v34, %v205_v24 }
 0x104   :  { %v150_v37 = vpop.f32.mrf.mxu0  ;;  %v170_v38 = vpop.f32.mrf.mxu1 }
 0x105   :  { %182 = vst [vmem:[#allocation7 + $0x18] sm:$0xff] %v156_v35  ;;  %186 = vst [vmem:[#allocation7 + $0x38] sm:$0xff] %v176_v36  ;;  %v151_v39 = vadd.f32 %v205_v24, %v150_v37  ;;  %v171_v40 = vadd.f32 %v205_v24, %v170_v38 }
 0x107   :  { %181 = vst [vmem:[#allocation7 + $0x10] sm:$0xff] %v151_v39  ;;  %185 = vst [vmem:[#allocation7 + $0x30] sm:$0xff] %v171_v40 }
 0x108   :  { %362 = shalt.err (!%p359_p0)
}
 0x109   :  { %198 = dma.vmem_to_hbm [thread:$0]  %s193_s25, 1024, %s426_s3, [#allocation4], %s378_s15, %s378_s15, %s379_s16  }
 0x10a   :  { %375 = dma.done.wait [#allocation4], 1024  }
 0x10b   :  { %376 = vsyncadd [#allocation4], 4294966272 }
 0x10c   :  { %202 = vsyncpa [#allocation3], 1 }
 0x10d   :  { %203 = vsyncpa [#allocation6], 1 }
 0x10e   :  { %204 = vsyncpa [#allocation4], 1 }

</bundles_post_ra>
